<compile_context>
chip_gen: v7x
topology: tpu7x:2x2x1
jax: 0.10.0
libtpu: 0.0.40
codegen_flags: <defaults>
</compile_context>

<pallas_src>
import functools

import jax
import jax.numpy as jnp
from jax import lax
from jax.experimental import pallas as pl
from jax.experimental.pallas import tpu as pltpu


def _resblock_kernel(seq_len, x_ref, w1_ref, b1_ref, w2_ref, b2_ref, o_ref):
    # x_ref/o_ref: (C, LB) with LB = nb*seq_len  (nb samples flattened on lanes).
    # w*_ref: (C, 3C) with column j = k*C_in + c_in, taps k in {l-1, l, l+1}.
    # b*_ref: (C, 1).
    c, lb = x_ref.shape

    w1 = w1_ref[...]
    w2 = w2_ref[...]
    # Hoisted bias broadcasts (used twice below; JAX does not CSE broadcast_in_dim).
    bias1 = jnp.broadcast_to(b1_ref[...].astype(jnp.float32), (c, lb))
    bias2 = jnp.broadcast_to(b2_ref[...].astype(jnp.float32), (c, lb))

    # Per-sample boundary masks.  The lane axis carries nb samples of length
    # seq_len back to back; masking lane % L == 0 / == L-1 both reproduces the
    # Conv1d zero padding and zeroes the roll wrap across sample (and block) edges.
    pos = lax.broadcasted_iota(jnp.int32, (c, lb), 1) % seq_len
    not_first = pos != 0
    not_last = pos != seq_len - 1

    def conv1d_k3(a, w, bias):
        # a: (C, LB) f32 activation.  Conv1d(k=3, pad=1) == one matmul over stacked taps.
        a_m1 = jnp.where(not_first, pltpu.roll(a, shift=1, axis=1), 0.0)        # a[l-1]
        a_p1 = jnp.where(not_last, pltpu.roll(a, shift=lb - 1, axis=1), 0.0)    # a[l+1]
        a3 = jnp.concatenate([a_m1, a, a_p1], axis=0)                           # (3C, LB)
        y = jnp.dot(w, a3.astype(w.dtype), preferred_element_type=jnp.float32)  # (C, LB)
        return y + bias

    x = x_ref[...].astype(jnp.float32)        # (C, LB)
    a1 = jnp.maximum(x, 0.0)                  # _activation1
    h1 = conv1d_k3(a1, w1, bias1)             # _conv1
    a2 = jnp.maximum(h1, 0.0)                 # _activation2
    h2 = conv1d_k3(a2, w2, bias2)             # _conv2
    o_ref[...] = (h2 + x).astype(o_ref.dtype)  # + residual


def _step_vmem_bytes(nb, C, L, io_bytes):
    lb = nb * L
    io = 2 * 2 * C * lb * io_bytes     # input + output blocks, double-buffered
    work = 12 * C * lb * 4             # f32 intermediates (taps, a3, conv outs, ...)
    return io + work


def _pick_block_batch(N, C, L, io_bytes, vmem_cap):
    """How many samples share one grid step (flattened onto the lane axis).

    Legal blocks: nb divides N and (nb*L) % 128 == 0, or nb == N (full lane extent).
    """
    budget = vmem_cap // 4  # leave headroom for double buffering + compiler scratch
    cands = {d for d in range(1, N + 1) if N % d == 0 and (d * L) % 128 == 0}
    cands.add(N)
    feasible = [d for d in cands if _step_vmem_bytes(d, C, L, io_bytes) <= budget]
    if not feasible:
        feasible = [min(cands, key=lambda d: _step_vmem_bytes(d, C, L, io_bytes))]

    def score(d):
        steps = N // d
        lane = d * L
        hbm_per_step = 2 * C * lane * io_bytes
        return (
            steps >= 2,                    # keep the pipeline / both v7x TCs fed
            min(lane, 128),                # lane-dense stores & MXU N-dim
            min(hbm_per_step, 1 << 20),    # amortize ~0.35us per-step overhead
            min(steps, 4),                 # ideally >=4 steps (2 per TC on v7x)
            -d,                            # then prefer more (smaller) steps
        )

    return max(feasible, key=score)


def residual_block_1d(x_ncl, w1, b1, w2, b2, *, block_batch=None,
                      compute_dtype=jnp.bfloat16):
    """x_ncl: (N, C, L); w*: (C_out, C_in, 3) [PyTorch layout]; b*: (C,).

    compute_dtype: dtype of the MXU matmul operands.  Default bf16 (fast MXU path
    on v5e/v6e/v7x; accumulation and elementwise stay f32) — expect ~1e-3..1e-2
    absolute error vs an f32 reference.  Pass jnp.float32 for exact (1e-5) match.
    """
    N, C, L = x_ncl.shape
    io_bytes = jnp.dtype(x_ncl.dtype).itemsize

    try:
        vmem_cap = int(pltpu.get_tpu_info().vmem_capacity_bytes)
    except Exception:
        vmem_cap = 64 << 20  # assume v7x per-TensorCore VMEM (most restrictive)

    if (block_batch is not None and N % block_batch == 0
            and ((block_batch * L) % 128 == 0 or block_batch == N)):
        nb = block_batch
    else:
        nb = _pick_block_batch(N, C, L, io_bytes, vmem_cap)

    LB = nb * L
    NL = N * L

    # One-time layout permute: channels on sublanes, flattened batch*seq on lanes.
    x_cl = jnp.transpose(x_ncl, (1, 0, 2)).reshape(C, NL)

    # Fused 3-tap weight: W3[o, k*C + i] = w[o, i, k]  (matches a3 row ordering).
    w1k = jnp.transpose(w1, (0, 2, 1)).reshape(C, 3 * C).astype(compute_dtype)
    w2k = jnp.transpose(w2, (0, 2, 1)).reshape(C, 3 * C).astype(compute_dtype)
    b1r = b1.reshape(C, 1).astype(jnp.float32)
    b2r = b2.reshape(C, 1).astype(jnp.float32)

    vmem_limit = int(min(vmem_cap * 3 // 4,
                         max(32 << 20, 2 * _step_vmem_bytes(nb, C, L, io_bytes))))

    # TODO(synk): halo-tile the sequence axis (1-element overlap in the index_map)
    # to bound VMEM for very long L, and zero-pad C to a multiple of 128 (256 on
    # v6e/v7x) for full MXU occupancy at large channel counts.
    out_cl = pl.pallas_call(
        functools.partial(_resblock_kernel, L),
        out_shape=jax.ShapeDtypeStruct((C, NL), x_ncl.dtype),
        grid=(NL // LB,),
        in_specs=[
            pl.BlockSpec((C, LB), lambda i: (0, i)),
            pl.BlockSpec((C, 3 * C), lambda i: (0, 0)),
            pl.BlockSpec((C, 1), lambda i: (0, 0)),
            pl.BlockSpec((C, 3 * C), lambda i: (0, 0)),
            pl.BlockSpec((C, 1), lambda i: (0, 0)),
        ],
        out_specs=pl.BlockSpec((C, LB), lambda i: (0, i)),
        compiler_params=pltpu.CompilerParams(
            dimension_semantics=("parallel",),
            vmem_limit_bytes=vmem_limit),
    )(x_cl, w1k, b1r, w2k, b2r)

    return jnp.transpose(out_cl.reshape(C, N, L), (1, 0, 2))


def _reference(x_ncl, w1, b1, w2, b2):
    """Pure-JAX reference mirroring the PyTorch forward."""
    def conv(a, w, b):
        y = lax.conv_general_dilated(
            a, w, window_strides=(1,), padding=((1, 1),),
            dimension_numbers=("NCH", "OIH", "NCH"))
        return y + b[None, :, None]

    a1 = jnp.maximum(x_ncl, 0.0)
    h1 = conv(a1, w1, b1)
    a2 = jnp.maximum(h1, 0.0)
    h2 = conv(a2, w2, b2)
    return h2 + x_ncl


if __name__ == "__main__":
    N, C, L = 4, 8, 16  # (batch, channels, sequence length)

    key = jax.random.PRNGKey(0)
    k1, k2, k3, k4, k5 = jax.random.split(key, 5)

    # Deterministic param init (PyTorch Conv1d-style uniform bound 1/sqrt(C_in * k))
    bound = float(1.0 / jnp.sqrt(jnp.array(C * 3, jnp.float32)))
    w1 = jax.random.uniform(k1, (C, C, 3), jnp.float32, -bound, bound)
    b1 = jax.random.uniform(k2, (C,), jnp.float32, -bound, bound)
    w2 = jax.random.uniform(k3, (C, C, 3), jnp.float32, -bound, bound)
    b2 = jax.random.uniform(k4, (C,), jnp.float32, -bound, bound)

    x = jax.random.normal(k5, (N, C, L), jnp.float32)

    ref = _reference(x, w1, b1, w2, b2)

    # Exact path: f32 MXU operands, tight tolerance.
    out_f32 = jax.block_until_ready(
        residual_block_1d(x, w1, b1, w2, b2, compute_dtype=jnp.float32))
    assert out_f32.shape == (N, C, L)
    assert jnp.allclose(out_f32, ref, atol=1e-5, rtol=1e-5), "f32 path mismatch"

    # Default fast path: bf16 MXU operands (f32 accumulation), relaxed tolerance.
    out_bf16 = jax.block_until_ready(residual_block_1d(x, w1, b1, w2, b2))
    assert jnp.allclose(out_bf16, ref, atol=5e-2, rtol=5e-2), "bf16 path mismatch"

    print("KERNEL_OK")
</pallas_src>

<mosaic_0001>
module attributes {stable_mosaic.version = 11 : i64} {
  func.func @_resblock_kernel(%arg0: i32, %arg1: memref<8x64xf32, #tpu.memory_space<vmem>>, %arg2: memref<8x24xf32, #tpu.memory_space<vmem>>, %arg3: memref<8x1xf32, #tpu.memory_space<vmem>>, %arg4: memref<8x24xf32, #tpu.memory_space<vmem>>, %arg5: memref<8x1xf32, #tpu.memory_space<vmem>>, %arg6: memref<8x64xf32, #tpu.memory_space<vmem>>) attributes {dimension_semantics = [#tpu.dimension_semantics<parallel>], iteration_bounds = array<i64: 1>, scalar_prefetch = 0 : i64, scratch_operands = 0 : i64, tpu.core_type = #tpu.core_type<tc>, window_params = [{transform_indices = @transform_0, window_bounds = array<i64: 8, 64>}, {pipeline_mode = #tpu.pipeline_mode<synchronous>, transform_indices = @transform_1, window_bounds = array<i64: 8, 24>}, {pipeline_mode = #tpu.pipeline_mode<synchronous>, transform_indices = @transform_2, window_bounds = array<i64: 8, 1>}, {pipeline_mode = #tpu.pipeline_mode<synchronous>, transform_indices = @transform_3, window_bounds = array<i64: 8, 24>}, {pipeline_mode = #tpu.pipeline_mode<synchronous>, transform_indices = @transform_4, window_bounds = array<i64: 8, 1>}, {transform_indices = @transform_5, window_bounds = array<i64: 8, 64>}]} {
    %c0 = arith.constant 0 : index
    %c0_0 = arith.constant 0 : index
    %0 = vector.load %arg2[%c0, %c0_0] : memref<8x24xf32, #tpu.memory_space<vmem>>, vector<8x24xf32>
    %c0_1 = arith.constant 0 : index
    %c0_2 = arith.constant 0 : index
    %1 = vector.load %arg4[%c0_1, %c0_2] : memref<8x24xf32, #tpu.memory_space<vmem>>, vector<8x24xf32>
    %c0_3 = arith.constant 0 : index
    %c0_4 = arith.constant 0 : index
    %2 = vector.load %arg3[%c0_3, %c0_4] : memref<8x1xf32, #tpu.memory_space<vmem>>, vector<8x1xf32>
    %3 = vector.shape_cast %2 : vector<8x1xf32> to vector<8x1xf32>
    %4 = vector.broadcast %3 : vector<8x1xf32> to vector<8x64xf32>
    %c0_5 = arith.constant 0 : index
    %c0_6 = arith.constant 0 : index
    %5 = vector.load %arg5[%c0_5, %c0_6] : memref<8x1xf32, #tpu.memory_space<vmem>>, vector<8x1xf32>
    %6 = vector.shape_cast %5 : vector<8x1xf32> to vector<8x1xf32>
    %7 = vector.broadcast %6 : vector<8x1xf32> to vector<8x64xf32>
    %8 = tpu.iota {dimensions = array<i32: 1>} : vector<8x64xi32>
    %c16_i32 = arith.constant 16 : i32
    %c0_i32 = arith.constant 0 : i32
    %9 = arith.cmpi eq, %c16_i32, %c0_i32 : i32
    %c1_i32 = arith.constant 1 : i32
    %10 = arith.select %9, %c1_i32, %c16_i32 : i32
    %11 = vector.broadcast %10 : i32 to vector<8x64xi32>
    %12 = arith.remsi %8, %11 : vector<8x64xi32>
    %c0_i32_7 = arith.constant 0 : i32
    %13 = vector.broadcast %c0_i32_7 : i32 to vector<8x64xi32>
    %14 = arith.cmpi ne, %12, %13 : vector<8x64xi32>
    %c0_i32_8 = arith.constant 0 : i32
    %15 = vector.broadcast %c0_i32_8 : i32 to vector<8x64xi32>
    %16 = arith.cmpi slt, %12, %15 : vector<8x64xi32>
    %c0_i32_9 = arith.constant 0 : i32
    %17 = arith.cmpi slt, %10, %c0_i32_9 : i32
    %18 = vector.broadcast %17 : i1 to vector<8x64xi1>
    %19 = vector.broadcast %18 : vector<8x64xi1> to vector<8x64xi1>
    %20 = arith.xori %16, %19 : vector<8x64xi1>
    %21 = arith.andi %20, %14 : vector<8x64xi1>
    %22 = vector.broadcast %10 : i32 to vector<8x64xi32>
    %23 = arith.addi %12, %22 : vector<8x64xi32>
    %24 = arith.select %21, %23, %12 : vector<8x64xi1>, vector<8x64xi32>
    %c0_i32_10 = arith.constant 0 : i32
    %25 = vector.broadcast %c0_i32_10 : i32 to vector<8x64xi32>
    %26 = arith.cmpi ne, %24, %25 : vector<8x64xi32>
    %c15_i32 = arith.constant 15 : i32
    %27 = vector.broadcast %c15_i32 : i32 to vector<8x64xi32>
    %28 = arith.cmpi ne, %24, %27 : vector<8x64xi32>
    %c0_11 = arith.constant 0 : index
    %c0_12 = arith.constant 0 : index
    %29 = vector.load %arg1[%c0_11, %c0_12] : memref<8x64xf32, #tpu.memory_space<vmem>>, vector<8x64xf32>
    %cst = arith.constant 0.000000e+00 : f32
    %30 = vector.broadcast %cst : f32 to vector<8x64xf32>
    %31 = arith.maximumf %29, %30 : vector<8x64xf32>
    %c1_i32_13 = arith.constant 1 : i32
    %32 = tpu.dynamic_rotate %31 by %c1_i32_13 dim 1 : vector<8x64xf32>, i32 -> vector<8x64xf32>
    %cst_14 = arith.constant 0.000000e+00 : f32
    %33 = vector.broadcast %cst_14 : f32 to vector<8x64xf32>
    %34 = arith.select %26, %32, %33 : vector<8x64xi1>, vector<8x64xf32>
    %c63_i32 = arith.constant 63 : i32
    %35 = tpu.dynamic_rotate %31 by %c63_i32 dim 1 : vector<8x64xf32>, i32 -> vector<8x64xf32>
    %cst_15 = arith.constant 0.000000e+00 : f32
    %36 = vector.broadcast %cst_15 : f32 to vector<8x64xf32>
    %37 = arith.select %28, %35, %36 : vector<8x64xi1>, vector<8x64xf32>
    %38 = tpu.concatenate %34, %31, %37 in 0 : vector<8x64xf32>, vector<8x64xf32>, vector<8x64xf32> -> vector<24x64xf32>
    %cst_16 = arith.constant dense<0.000000e+00> : vector<8x64xf32>
    %39 = tpu.matmul %0, %38, %cst_16 {dimension_numbers = #tpu.dot_dimension_numbers<[1], [0], [0], [1], [0, 0, 1, 1], [], []>} : vector<8x24xf32>, vector<24x64xf32>, vector<8x64xf32> -> vector<8x64xf32>
    %40 = arith.addf %39, %4 : vector<8x64xf32>
    %cst_17 = arith.constant 0.000000e+00 : f32
    %41 = vector.broadcast %cst_17 : f32 to vector<8x64xf32>
    %42 = arith.maximumf %40, %41 : vector<8x64xf32>
    %c1_i32_18 = arith.constant 1 : i32
    %43 = tpu.dynamic_rotate %42 by %c1_i32_18 dim 1 : vector<8x64xf32>, i32 -> vector<8x64xf32>
    %cst_19 = arith.constant 0.000000e+00 : f32
    %44 = vector.broadcast %cst_19 : f32 to vector<8x64xf32>
    %45 = arith.select %26, %43, %44 : vector<8x64xi1>, vector<8x64xf32>
    %c63_i32_20 = arith.constant 63 : i32
    %46 = tpu.dynamic_rotate %42 by %c63_i32_20 dim 1 : vector<8x64xf32>, i32 -> vector<8x64xf32>
    %cst_21 = arith.constant 0.000000e+00 : f32
    %47 = vector.broadcast %cst_21 : f32 to vector<8x64xf32>
    %48 = arith.select %28, %46, %47 : vector<8x64xi1>, vector<8x64xf32>
    %49 = tpu.concatenate %45, %42, %48 in 0 : vector<8x64xf32>, vector<8x64xf32>, vector<8x64xf32> -> vector<24x64xf32>
    %cst_22 = arith.constant dense<0.000000e+00> : vector<8x64xf32>
    %50 = tpu.matmul %1, %49, %cst_22 {dimension_numbers = #tpu.dot_dimension_numbers<[1], [0], [0], [1], [0, 0, 1, 1], [], []>} : vector<8x24xf32>, vector<24x64xf32>, vector<8x64xf32> -> vector<8x64xf32>
    %51 = arith.addf %50, %7 : vector<8x64xf32>
    %52 = arith.addf %51, %29 : vector<8x64xf32>
    %c0_23 = arith.constant 0 : index
    %c0_24 = arith.constant 0 : index
    %53 = vector.load %arg6[%c0_23, %c0_24] : memref<8x64xf32, #tpu.memory_space<vmem>>, vector<8x64xf32>
    tpu.vector_store %arg6[%c0_23, %c0_24], %52 {strides = array<i32>} : memref<8x64xf32, #tpu.memory_space<vmem>>, vector<8x64xf32>,
    return
  }
  func.func @transform_0(%arg0: i32) -> (i32, i32) {
    %c0_i32 = arith.constant 0 : i32
    %c0_i32_0 = arith.constant 0 : i32
    return %c0_i32, %arg0 : i32, i32
  }
  func.func @transform_1(%arg0: i32) -> (i32, i32) {
    %c0_i32 = arith.constant 0 : i32
    %c0_i32_0 = arith.constant 0 : i32
    %c0_i32_1 = arith.constant 0 : i32
    return %c0_i32, %c0_i32_0 : i32, i32
  }
  func.func @transform_2(%arg0: i32) -> (i32, i32) {
    %c0_i32 = arith.constant 0 : i32
    %c0_i32_0 = arith.constant 0 : i32
    %c0_i32_1 = arith.constant 0 : i32
    return %c0_i32, %c0_i32_0 : i32, i32
  }
  func.func @transform_3(%arg0: i32) -> (i32, i32) {
    %c0_i32 = arith.constant 0 : i32
    %c0_i32_0 = arith.constant 0 : i32
    %c0_i32_1 = arith.constant 0 : i32
    return %c0_i32, %c0_i32_0 : i32, i32
  }
  func.func @transform_4(%arg0: i32) -> (i32, i32) {
    %c0_i32 = arith.constant 0 : i32
    %c0_i32_0 = arith.constant 0 : i32
    %c0_i32_1 = arith.constant 0 : i32
    return %c0_i32, %c0_i32_0 : i32, i32
  }
  func.func @transform_5(%arg0: i32) -> (i32, i32) {
    %c0_i32 = arith.constant 0 : i32
    %c0_i32_0 = arith.constant 0 : i32
    return %c0_i32, %arg0 : i32, i32
  }
}

</mosaic_0001>

<bundles_post_ra>
// kernel: tpu_custom_call.1
= control target key start
LH: loop header
LB: loop body
LE: loop exit
PB: predicated region body
PF: predicated region fallthrough
CT: control target
= control target key end

     0   :  { %s421_s0 = inlined_call_operand.vmem [shape: f32[8,64], index: 0, kind: input, shape index: {}]   ;;  %s422_s1 = inlined_call_operand.vmem [shape: f32[8,24], index: 1, kind: input, shape index: {}]   ;;  %s423_s2 = inlined_call_operand.vmem [shape: f32[8,1], index: 2, kind: input, shape index: {}]   ;;  %s424_s3 = inlined_call_operand.vmem [shape: f32[8,24], index: 3, kind: input, shape index: {}]   ;;  %s425_s4 = inlined_call_operand.vmem [shape: f32[8,1], index: 4, kind: input, shape index: {}]   ;;  %s426_s5 = inlined_call_operand.hbm [shape: f32[8,64], index: 5, kind: output, shape index: {}]  }
   0x1   :  { %v365_v0 = vld [vmem:[%s421_s0] sm:$0xff] }
   0x2   :  { %10 = vsyncpa [#allocation3], 0  ;;  %v52_v1 = vmax.f32 %v365_v0, 0.0  ;;  %s323_s20 = smov 64   ;;  %vm53_vm0 = vcmask 1048064   ;;  %v324_v4 = vmov 0.0|0.0   ;;  %v35_v10 = vlaneseq }
   0x3   :  { %281 = vmatprep.subr.bf16.mxu0 %v324_v4  ;;  %285 = vmatprep.subr.bf16.mxu1 %v324_v4  ;;  %vm325_vm1 = vmmov 0   ;;  %v326_v5 = vmov 0.0   ;;  %v23_v6 = vld [vmem:[%s423_s2] sm:$0xff]  ;;  %v327_v7 = vmov 0   ;;  %s328_s22 = smov 65   ;;  %s329_s23 = smov 127  }
   0x4   :  { %54 = vrot.lane.b32.xlu0 %v52_v1, %s323_s20  ;;  %269 = vmatprep.mubr.msk.f32.mxu0 %vm325_vm1, %v326_v5  ;;  %v36_v11 = vand.u32 127, %v35_v10  ;;  %vm330_vm3 = vmmov 1   ;;  %v21_v17 = vld [vmem:[%s422_s1] sm:$0xff]  ;;  %vm69_vm6 = vcmask 195584   ;;  %vm233_vm7 = vcmask 523264  }
   0x5   :  { %278 = vmatprep.mubr.msk.f32.mxu1 %vm325_vm1, %v326_v5  ;;  %298 = vset.pattern.permute.xlu0 %v327_v7  ;;  %v29_v28 = vld [vmem:[%s425_s4] sm:$0xff]  ;;  %s331_s4 = smov [#allocation2]  }
   0x6   :  { %v41_v12 = vand.u32 15, %v36_v11  ;;  %v22_v31 = vld [vmem:[%s424_s3] sm:$0xff]  ;;  %s241_s28 = sshll.u32 %s331_s4, 4  ;;  %s242_s28 = int_to_ptr.vmem [resolvable:$true] %s241_s28 }
   0x7   :  { %s299_s29 = scalar_lea.vmem %s242_s28, 128  ;;  %p304_p1 = scmp.lt.s32.totalorder %s242_s28, %s242_s28 }
   0x8   :  { %vm49_vm2 = vcmp.ne.s32.totalorder %v41_v12, 0  ;;  %vm382_vm5 = vcmp.ne.s32.totalorder %v41_v12, 15  ;;  %p300_p0 = scmp.ne.s32.totalorder %s242_s28, %s299_s29  ;;  %p305_p2 = scmp.lt.s32.totalorder %s299_s29, %s299_s29 }
   0x9   :  { %vm376_vm4 = vmpackc.low %vm330_vm3, %vm49_vm2 }
   0xa   :  { %p306_p3 = por %p305_p2, %p304_p1 }
   0xc   :  { %p307_p4 = pnand %p306_p3, %p300_p0 }
  0x76   :  { %v55_v2 = vpop.permute.xlu0 %54 }
  0x77   :  { %v56_v3 = vsel %vm53_vm0, %v55_v2, %v52_v1 }
  0x78   :  { %57 = vrot.lane.b32.xlu0 %v56_v3, %s323_s20 }
  0x7c   :  { %26 = vperm.xlu0 %298, %v23_v6  }
  0xea   :  { %v58_v8 = vpop.permute.xlu0 %57 }
  0xeb   :  { %v59_v9 = vsel %vm53_vm0, %v58_v8, %v52_v1 }
  0xec   :  { %61 = vrot.lane.b32.xlu1 %v59_v9, %s328_s22 }
  0xf0   :  { %65 = vrot.lane.b32.xlu1 %v59_v9, %s329_s23 }
  0xfb   :  { %v27_v19 = vpop.permute.xlu0 %26 }
 0x15e   :  { %v62_v13 = vpop.permute.xlu1 %61 }
 0x15f   :  { %v282_v15 = vpack.c.bf16 %v52_v1, %v62_v13 }
 0x161   :  { %284 = vmatpush3.bf16.msk.msra.mxu0 %vm376_vm4, %v282_v15 }
 0x162   :  { %267 = vmatprep.subr.mxu0 %v326_v5  ;;  %v66_v18 = vpop.permute.xlu1 %65 }
 0x165   :  { %268 = vmatpush3.msk.msra.mxu0 %vm382_vm5, %v66_v18 }
 0x166   :  { %270 = vmatmul.mubr.msk.f32.vlgmr.msra.gmra.mrb[0].mxu0 %vm69_vm6, %v21_v17 }
 0x239   :  { %v139_v20 = vpop.f32.mrb[0].mxu0 }
 0x23a   :  { %v140_v21 = vadd.f32 %v139_v20, %v27_v19  ;;  %v271_v22 = vpop.f32.mrb[1].mxu0 }
 0x23c   :  { %v143_v23 = vmax.f32 %v140_v21, 0.0 }
 0x23e   :  { %144 = vrot.lane.b32.xlu1 %v143_v23, %s323_s20 }
 0x2b0   :  { %v145_v24 = vpop.permute.xlu1 %144 }
 0x2b1   :  { %v146_v25 = vsel %vm53_vm0, %v145_v24, %v143_v23 }
 0x2b2   :  { %147 = vrot.lane.b32.xlu1 %v146_v25, %s323_s20 }
 0x324   :  { %v148_v26 = vpop.permute.xlu1 %147 }
 0x325   :  { %v149_v27 = vsel %vm53_vm0, %v148_v26, %v143_v23 }
 0x326   :  { %155 = vrot.lane.b32.xlu1 %v149_v27, %s329_s23  ;;  %151 = vrot.lane.b32.xlu0 %v149_v27, %s328_s22 }
 0x32a   :  { %32 = vperm.xlu0 %298, %v29_v28  }
 0x398   :  { %v152_v29 = vpop.permute.xlu0 %151  ;;  %v156_v32 = vpop.permute.xlu1 %155 }
 0x399   :  { %v286_v30 = vpack.c.bf16 %v143_v23, %v152_v29 }
 0x39b   :  { %288 = vmatpush3.bf16.msk.msra.mxu1 %vm376_vm4, %v286_v30 }
 0x39c   :  { %276 = vmatprep.subr.mxu1 %v326_v5 }
 0x39f   :  { %277 = vmatpush3.msk.msra.mxu1 %vm382_vm5, %v156_v32 }
 0x3a0   :  { %279 = vmatmul.mubr.msk.f32.vlgmr.msra.gmra.mrb[0].mxu1 %vm69_vm6, %v22_v31 }
 0x3a9   :  { %v33_v33 = vpop.permute.xlu0 %32 }
 0x473   :  { %v228_v34 = vpop.f32.mrb[0].mxu1 }
 0x474   :  { %v229_v35 = vadd.f32 %v228_v34, %v33_v33  ;;  %v280_v36 = vpop.f32.mrb[1].mxu1 }
 0x476   :  { %v232_v37 = vadd.f32 %v229_v35, %v365_v0 }
 0x478   :  { %234 = vst.msk [vmem:[#allocation2] sm:$0xff] %vm233_vm7, %v232_v37 }
 0x479   :  { %310 = shalt.err (!%p307_p4)
}
 0x47a   :  { %s311_s6 = scalar_lea.hbm %s426_s5, 128 }
 0x47b   :  { %p312_p5 = scmp.ne.s32.totalorder %s426_s5, %s311_s6  ;;  %p315_p6 = scmp.lt.u32.totalorder %s311_s6, %s426_s5 }
 0x47d   :  { %p317_p7 = pnand %p315_p6, %p312_p5 }
 0x47f   :  { %320 = shalt.err (!%p317_p7)
}
 0x480   :  { %244 = dma.vmem_to_hbm [thread:$0]  %s242_s28, 128, %s426_s5, [#allocation3]  }
 0x481   :  { %321 = dma.done.wait [#allocation3], 128  }
 0x482   :  { %322 = vsyncadd [#allocation3], 4294967168 }
 0x483   :  { %248 = vsyncpa [#allocation3], 1 }

</bundles_post_ra>
